<compile_context>
chip_gen: v6e
topology: v6e:2x2x1
jax: 0.10.0
libtpu: 0.0.40
codegen_flags: <defaults>
</compile_context>

<pallas_src>
import functools

import jax
import jax.numpy as jnp
from jax.experimental import pallas as pl
from jax.experimental.pallas import tpu as pltpu


_NEG_SLOPE = 0.05
_BLOCK_TARGET_BYTES = 2 * 1024 * 1024   # ~2 MiB x-blocks -> ~85%+ of HBM roofline
_FUSED_SLAB_BYTES = 2 * 1024 * 1024     # fuse when a (C, HW) slab fits comfortably
_VMEM_CAP_BYTES = 32 * 1024 * 1024      # safe scoped limit on v5e/v6e/v7x


def _round_down(v, m):
    return (v // m) * m


def _pick_row_tile(rows, itemsize, max_rows=256):
    """Row tile of the flattened (B*C, HW) view; multiple of the sublane pack."""
    sub = {4: 8, 2: 16, 1: 32}.get(itemsize, 8)
    if rows <= sub:
        return rows                      # full extent is always legal
    tile = _round_down(min(rows, max_rows), sub)
    # Keep >= 2 row blocks so the leading "parallel" axis can span both v7x cores.
    if rows >= 2 * sub:
        tile = min(tile, max(sub, _round_down(rows // 2, sub)))
    return max(tile, sub)


def _pick_hw_tile(hw, row_tile, itemsize, target_bytes):
    """Lane tile: multiple of 128 sized by a byte budget; prefer exact divisors."""
    if hw <= 128 or hw * row_tile * itemsize <= target_bytes:
        return hw                        # full extent is always legal
    budget = max(128, _round_down(target_bytes // (row_tile * itemsize), 128))
    budget = min(budget, _round_down(hw, 128))
    # Prefer a tile that divides HW exactly (no masked tail) if one is close.
    for t in range(budget, max(127, budget // 2 - 1), -128):
        if hw % t == 0:
            return t
    return budget


def _fused_kernel(x_ref, w1_ref, b1_ref, w2_ref, b2_ref, o_ref, *, inv_hw):
    """Single pass: pool + SE MLP + sigmoid + gate on a resident (C, HW) slab."""
    x = x_ref[...]                                                  # (C, HW)
    pooled = jnp.sum(x.astype(jnp.float32), axis=-1, keepdims=True) * inv_hw
    # 1x1 conv == (C_out, C_in) @ (C_in, 1) + bias; weights used untransposed.
    y = jnp.dot(w1_ref[...], pooled,
                preferred_element_type=jnp.float32) + b1_ref[...]
    y = jnp.where(y >= 0, y, _NEG_SLOPE * y)                        # LeakyReLU(0.05)
    y = jnp.dot(w2_ref[...], y,
                preferred_element_type=jnp.float32) + b2_ref[...]
    s = jax.nn.sigmoid(y).astype(x.dtype)                           # (C, 1)
    o_ref[...] = x * s


def _pool_kernel(x_ref, sum_ref, *, hw_total, hw_tile, mask_tail):
    """Per-row spatial sums; the f32 output block is the resident accumulator."""
    j = pl.program_id(1)

    @pl.when(j == 0)
    def _init():
        sum_ref[...] = jnp.zeros_like(sum_ref)

    x = x_ref[...].astype(jnp.float32)                              # (rt, hw_tile)
    if mask_tail:
        lane = jax.lax.broadcasted_iota(jnp.int32, x.shape, 1)
        x = jnp.where(j * hw_tile + lane < hw_total, x, 0.0)
    sum_ref[...] += jnp.sum(x, axis=-1, keepdims=True)              # (rt, 1)


def _gate_kernel(x_ref, s_ref, o_ref):
    """x * per-row scale; lane-dense (HW on lanes)."""
    o_ref[...] = x_ref[...] * s_ref[...]


def caesa_forward(x_nchw, w1, b1, w2, b2, *,
                  fused_slab_bytes=_FUSED_SLAB_BYTES,
                  block_target_bytes=_BLOCK_TARGET_BYTES):
    """x_nchw: (B, C, H, W). w1/w2: (C, C) 1x1-conv weights. b1/b2: (C,)."""
    B, C, H, W = x_nchw.shape
    HW = H * W
    itemsize = jnp.dtype(x_nchw.dtype).itemsize
    slab_bytes = C * HW * itemsize

    if slab_bytes <= fused_slab_bytes:
        # ---- fused single pass: read x once, write the gated result once ----
        x3 = x_nchw.reshape(B, C, HW)                 # free reshape, HW on lanes
        b1c = b1.reshape(C, 1)
        b2c = b2.reshape(C, 1)
        x_spec = pl.BlockSpec((pl.Squeezed(), C, HW), lambda b: (b, 0, 0))
        w_spec = pl.BlockSpec((C, C), lambda b: (0, 0))
        bias_spec = pl.BlockSpec((C, 1), lambda b: (0, 0))
        vmem = int(min(_VMEM_CAP_BYTES,
                       max(12 << 20, 6 * slab_bytes + 8 * C * C + (2 << 20))))
        out = pl.pallas_call(
            functools.partial(_fused_kernel, inv_hw=1.0 / HW),
            out_shape=jax.ShapeDtypeStruct((B, C, HW), x_nchw.dtype),
            grid_spec=pltpu.PrefetchScalarGridSpec(
                num_scalar_prefetch=0,
                grid=(B,),
                in_specs=[x_spec, w_spec, bias_spec, w_spec, bias_spec],
                out_specs=x_spec,
            ),
            compiler_params=pltpu.CompilerParams(
                dimension_semantics=("parallel",),
                vmem_limit_bytes=vmem),
        )(x3, w1, b1c, w2, b2c)
        return out.reshape(B, C, H, W)

    # ---- two-pass path for large activations ----
    rows = B * C
    x2 = x_nchw.reshape(rows, HW)                     # fills sublanes for any C
    row_tile = _pick_row_tile(rows, itemsize)
    hw_tile = _pick_hw_tile(HW, row_tile, itemsize, block_target_bytes)
    n_rows = pl.cdiv(rows, row_tile)
    n_hw = pl.cdiv(HW, hw_tile)
    mask_tail = (HW % hw_tile) != 0
    block_bytes = row_tile * hw_tile * itemsize

    x_spec = pl.BlockSpec((row_tile, hw_tile), lambda i, j: (i, j))
    col_spec = pl.BlockSpec((row_tile, 1), lambda i, j: (i, 0))

    # Pass 1: per-row spatial sums (HW is the trailing reduction axis).
    sums = pl.pallas_call(
        functools.partial(_pool_kernel, hw_total=HW, hw_tile=hw_tile,
                          mask_tail=mask_tail),
        out_shape=jax.ShapeDtypeStruct((rows, 1), jnp.float32),
        grid_spec=pltpu.PrefetchScalarGridSpec(
            num_scalar_prefetch=0,
            grid=(n_rows, n_hw),
            in_specs=[x_spec],
            out_specs=col_spec,
        ),
        compiler_params=pltpu.CompilerParams(
            dimension_semantics=("parallel", "arbitrary"),
            vmem_limit_bytes=int(min(_VMEM_CAP_BYTES,
                                     max(12 << 20, 3 * block_bytes + (2 << 20))))),
    )(x2)

    # Tiny SE MLP on the pooled (B, C) tensor in plain JAX: better shaped as
    # (B,C)@(C,C) than a degenerate N=1 MXU matmul on the last tile of pass 1,
    # and it frees pass-1 VMEM for bigger x tiles.
    pooled = sums.reshape(B, C) * (1.0 / HW)
    y = pooled @ w1.T.astype(jnp.float32) + b1.astype(jnp.float32)
    y = jnp.where(y >= 0, y, _NEG_SLOPE * y)
    y = y @ w2.T.astype(jnp.float32) + b2.astype(jnp.float32)
    scale = jax.nn.sigmoid(y).astype(x_nchw.dtype).reshape(rows, 1)

    # Pass 2: fully parallel per-row gating (uses both TensorCores on v7x).
    out = pl.pallas_call(
        _gate_kernel,
        out_shape=jax.ShapeDtypeStruct((rows, HW), x_nchw.dtype),
        grid_spec=pltpu.PrefetchScalarGridSpec(
            num_scalar_prefetch=0,
            grid=(n_rows, n_hw),
            in_specs=[x_spec, col_spec],
            out_specs=x_spec,
        ),
        compiler_params=pltpu.CompilerParams(
            dimension_semantics=("parallel", "parallel"),
            vmem_limit_bytes=int(min(_VMEM_CAP_BYTES,
                                     max(12 << 20, 5 * block_bytes + (2 << 20))))),
    )(x2, scale)

    return out.reshape(B, C, H, W)


def caesa_reference(x_nchw, w1, b1, w2, b2):
    """Pure-JAX reference mirroring the PyTorch forward."""
    pooled = jnp.mean(x_nchw, axis=(2, 3))                     # (B, C)
    y = pooled @ w1.T + b1
    y = jnp.where(y >= 0, y, _NEG_SLOPE * y)
    y = y @ w2.T + b2
    scale = jax.nn.sigmoid(y)                                  # (B, C)
    return x_nchw * scale[:, :, None, None]


if __name__ == "__main__":
    key = jax.random.PRNGKey(0)
    B, C, H, W = 2, 4, 16, 16

    k_x, k_w1, k_b1, k_w2, k_b2 = jax.random.split(key, 5)
    x = jax.random.normal(k_x, (B, C, H, W), dtype=jnp.float32)
    # 1x1 conv weights flattened to (C_out, C_in)
    w1 = jax.random.normal(k_w1, (C, C), dtype=jnp.float32) * 0.1
    b1 = jax.random.normal(k_b1, (C,), dtype=jnp.float32) * 0.1
    w2 = jax.random.normal(k_w2, (C, C), dtype=jnp.float32) * 0.1
    b2 = jax.random.normal(k_b2, (C,), dtype=jnp.float32) * 0.1

    # Main check: small shape takes the fused single-pass path.
    out = caesa_forward(x, w1, b1, w2, b2)
    jax.block_until_ready(out)
    ref = caesa_reference(x, w1, b1, w2, b2)
    assert out.shape == (B, C, H, W)
    assert jnp.allclose(out, ref, atol=1e-5, rtol=1e-5), "fused path mismatch"

    # Second check: force the two-pass / row-tiled / masked-HW-tail path
    # (HW = 483 is not a multiple of 128; small byte budget forces tiling).
    B2, C2, H2, W2 = 2, 16, 23, 21
    kk = jax.random.split(jax.random.PRNGKey(1), 5)
    x2 = jax.random.normal(kk[0], (B2, C2, H2, W2), dtype=jnp.float32)
    w1b = jax.random.normal(kk[1], (C2, C2), dtype=jnp.float32) * 0.1
    b1b = jax.random.normal(kk[2], (C2,), dtype=jnp.float32) * 0.1
    w2b = jax.random.normal(kk[3], (C2, C2), dtype=jnp.float32) * 0.1
    b2b = jax.random.normal(kk[4], (C2,), dtype=jnp.float32) * 0.1
    out2 = caesa_forward(x2, w1b, b1b, w2b, b2b,
                         fused_slab_bytes=0, block_target_bytes=16 * 1024)
    jax.block_until_ready(out2)
    ref2 = caesa_reference(x2, w1b, b1b, w2b, b2b)
    assert out2.shape == (B2, C2, H2, W2)
    assert jnp.allclose(out2, ref2, atol=1e-5, rtol=1e-5), "two-pass path mismatch"

    print("KERNEL_OK")
</pallas_src>

<mosaic_0001>
module attributes {stable_mosaic.version = 11 : i64} {
  func.func @_fused_kernel(%arg0: i32, %arg1: memref<1x4x256xf32, #tpu.memory_space<vmem>>, %arg2: memref<4x4xf32, #tpu.memory_space<vmem>>, %arg3: memref<4x1xf32, #tpu.memory_space<vmem>>, %arg4: memref<4x4xf32, #tpu.memory_space<vmem>>, %arg5: memref<4x1xf32, #tpu.memory_space<vmem>>, %arg6: memref<1x4x256xf32, #tpu.memory_space<vmem>>) attributes {dimension_semantics = [#tpu.dimension_semantics<parallel>], iteration_bounds = array<i64: 2>, scalar_prefetch = 0 : i64, scratch_operands = 0 : i64, tpu.core_type = #tpu.core_type<tc>, window_params = [{transform_indices = @transform_0, window_bounds = array<i64: 1, 4, 256>}, {pipeline_mode = #tpu.pipeline_mode<synchronous>, transform_indices = @transform_1, window_bounds = array<i64: 4, 4>}, {pipeline_mode = #tpu.pipeline_mode<synchronous>, transform_indices = @transform_2, window_bounds = array<i64: 4, 1>}, {pipeline_mode = #tpu.pipeline_mode<synchronous>, transform_indices = @transform_3, window_bounds = array<i64: 4, 4>}, {pipeline_mode = #tpu.pipeline_mode<synchronous>, transform_indices = @transform_4, window_bounds = array<i64: 4, 1>}, {transform_indices = @transform_5, window_bounds = array<i64: 1, 4, 256>}]} {
    %c0 = arith.constant 0 : index
    %c0_0 = arith.constant 0 : index
    %c0_1 = arith.constant 0 : index
    %0 = vector.load %arg1[%c0, %c0_0, %c0_1] : memref<1x4x256xf32, #tpu.memory_space<vmem>>, vector<1x4x256xf32>
    %1 = vector.shape_cast %0 : vector<1x4x256xf32> to vector<4x256xf32>
    %cst = arith.constant dense<0.000000e+00> : vector<4xf32>
    %2 = vector.multi_reduction <add>, %1, %cst [1] : vector<4x256xf32> to vector<4xf32>
    %3 = vector.shape_cast %2 : vector<4xf32> to vector<4x1xf32>
    %cst_2 = arith.constant 3.906250e-03 : f32
    %4 = vector.broadcast %cst_2 : f32 to vector<4x1xf32>
    %5 = arith.mulf %3, %4 : vector<4x1xf32>
    %c0_3 = arith.constant 0 : index
    %c0_4 = arith.constant 0 : index
    %6 = vector.load %arg2[%c0_3, %c0_4] : memref<4x4xf32, #tpu.memory_space<vmem>>, vector<4x4xf32>
    %cst_5 = arith.constant dense<0.000000e+00> : vector<4x1xf32>
    %7 = tpu.matmul %6, %5, %cst_5 {dimension_numbers = #tpu.dot_dimension_numbers<[1], [0], [0], [1], [0, 0, 1, 1], [], []>} : vector<4x4xf32>, vector<4x1xf32>, vector<4x1xf32> -> vector<4x1xf32>
    %c0_6 = arith.constant 0 : index
    %c0_7 = arith.constant 0 : index
    %8 = vector.load %arg3[%c0_6, %c0_7] : memref<4x1xf32, #tpu.memory_space<vmem>>, vector<4x1xf32>
    %9 = arith.addf %7, %8 : vector<4x1xf32>
    %cst_8 = arith.constant 0.000000e+00 : f32
    %10 = vector.broadcast %cst_8 : f32 to vector<4x1xf32>
    %11 = arith.cmpf oge, %9, %10 : vector<4x1xf32>
    %cst_9 = arith.constant 5.000000e-02 : f32
    %12 = vector.broadcast %cst_9 : f32 to vector<4x1xf32>
    %13 = arith.mulf %12, %9 : vector<4x1xf32>
    %14 = arith.select %11, %9, %13 : vector<4x1xi1>, vector<4x1xf32>
    %c0_10 = arith.constant 0 : index
    %c0_11 = arith.constant 0 : index
    %15 = vector.load %arg4[%c0_10, %c0_11] : memref<4x4xf32, #tpu.memory_space<vmem>>, vector<4x4xf32>
    %cst_12 = arith.constant dense<0.000000e+00> : vector<4x1xf32>
    %16 = tpu.matmul %15, %14, %cst_12 {dimension_numbers = #tpu.dot_dimension_numbers<[1], [0], [0], [1], [0, 0, 1, 1], [], []>} : vector<4x4xf32>, vector<4x1xf32>, vector<4x1xf32> -> vector<4x1xf32>
    %c0_13 = arith.constant 0 : index
    %c0_14 = arith.constant 0 : index
    %17 = vector.load %arg5[%c0_13, %c0_14] : memref<4x1xf32, #tpu.memory_space<vmem>>, vector<4x1xf32>
    %18 = arith.addf %16, %17 : vector<4x1xf32>
    %19 = arith.negf %18 : vector<4x1xf32>
    %20 = math.exp %19 : vector<4x1xf32>
    %cst_15 = arith.constant 1.000000e+00 : f32
    %21 = vector.broadcast %cst_15 : f32 to vector<4x1xf32>
    %22 = arith.addf %21, %20 : vector<4x1xf32>
    %23 = arith.divf %21, %22 : vector<4x1xf32>
    %24 = vector.broadcast %23 : vector<4x1xf32> to vector<4x256xf32>
    %25 = arith.mulf %1, %24 : vector<4x256xf32>
    %c0_16 = arith.constant 0 : index
    %c0_17 = arith.constant 0 : index
    %c0_18 = arith.constant 0 : index
    %26 = vector.load %arg6[%c0_16, %c0_17, %c0_18] : memref<1x4x256xf32, #tpu.memory_space<vmem>>, vector<1x4x256xf32>
    %27 = vector.shape_cast %26 : vector<1x4x256xf32> to vector<4x256xf32>
    %28 = vector.shape_cast %25 : vector<4x256xf32> to vector<1x4x256xf32>
    tpu.vector_store %arg6[%c0_16, %c0_17, %c0_18], %28 {strides = array<i32>} : memref<1x4x256xf32, #tpu.memory_space<vmem>>, vector<1x4x256xf32>,
    return
  }
  func.func @transform_0(%arg0: i32) -> (i32, i32, i32) {
    %c0_i32 = arith.constant 0 : i32
    %c0_i32_0 = arith.constant 0 : i32
    %c0_i32_1 = arith.constant 0 : i32
    return %arg0, %c0_i32, %c0_i32_0 : i32, i32, i32
  }
  func.func @transform_1(%arg0: i32) -> (i32, i32) {
    %c0_i32 = arith.constant 0 : i32
    %c0_i32_0 = arith.constant 0 : i32
    %c0_i32_1 = arith.constant 0 : i32
    return %c0_i32, %c0_i32_0 : i32, i32
  }
  func.func @transform_2(%arg0: i32) -> (i32, i32) {
    %c0_i32 = arith.constant 0 : i32
    %c0_i32_0 = arith.constant 0 : i32
    %c0_i32_1 = arith.constant 0 : i32
    return %c0_i32, %c0_i32_0 : i32, i32
  }
  func.func @transform_3(%arg0: i32) -> (i32, i32) {
    %c0_i32 = arith.constant 0 : i32
    %c0_i32_0 = arith.constant 0 : i32
    %c0_i32_1 = arith.constant 0 : i32
    return %c0_i32, %c0_i32_0 : i32, i32
  }
  func.func @transform_4(%arg0: i32) -> (i32, i32) {
    %c0_i32 = arith.constant 0 : i32
    %c0_i32_0 = arith.constant 0 : i32
    %c0_i32_1 = arith.constant 0 : i32
    return %c0_i32, %c0_i32_0 : i32, i32
  }
  func.func @transform_5(%arg0: i32) -> (i32, i32, i32) {
    %c0_i32 = arith.constant 0 : i32
    %c0_i32_0 = arith.constant 0 : i32
    %c0_i32_1 = arith.constant 0 : i32
    return %arg0, %c0_i32, %c0_i32_0 : i32, i32, i32
  }
}

</mosaic_0001>

<bundles_post_ra>
// kernel: tpu_custom_call.1
= control target key start
LH: loop header
LB: loop body
LE: loop exit
PB: predicated region body
PF: predicated region fallthrough
CT: control target
= control target key end

     0   :  { %10 = vsyncpa [#allocation3], 0  ;;  %s899_s0 = inlined_call_operand.hbm [shape: f32[2,4,256], index: 0, kind: input, shape index: {}]   ;;  %s900_s1 = inlined_call_operand.vmem [shape: f32[4,4], index: 1, kind: input, shape index: {}]   ;;  %s901_s2 = inlined_call_operand.vmem [shape: f32[4,1], index: 2, kind: input, shape index: {}]   ;;  %s902_s3 = inlined_call_operand.vmem [shape: f32[4,4], index: 3, kind: input, shape index: {}]   ;;  %s903_s4 = inlined_call_operand.vmem [shape: f32[4,1], index: 4, kind: input, shape index: {}]   ;;  %s904_s5 = inlined_call_operand.hbm [shape: f32[2,4,256], index: 5, kind: output, shape index: {}]  }
   0x1   :  { %12 = vsyncpa [#allocation3 + $0x1], 0 }
   0x2   :  { %13 = vsyncpa [#allocation4], 0 }
   0x3   :  { %15 = vsyncpa [#allocation4 + $0x1], 0  ;;  %s738_s18 = smov 0   ;;  %s740_s19 = smov 0  }
   0x4   :  { %s742_s20 = smov 0   ;;  %s744_s21 = smov 0  }
   0x5 LB: > { %s759_s22 = sadd.s32 4294967295, %s700_s21   ;;  %s517_s23 = sadd.s32 4294967294, %s700_s21   ;;  %s700_s21 = sphi %s744_s21, %s921_s21   ;;  %s696_s20 = sphi %s742_s20, %s920_s20   ;;  %s692_s19 = sphi %s740_s19, %s919_s19   ;;  %s688_s18 = sphi %s738_s18, %s918_s18  }
   0x6   : > { %s763_s24 = sadd.s32 1, %s700_s21   ;;  %s28_s25 = sadd.s32 1, %s696_s20 }
   0x7   : > { %s25_s26 = ssub.s32 %s700_s21, %s763_s24  ;;  %p35_p0 = scmp.ne.s32.totalorder %s696_s20, %s692_s19 }
   0x8   : > { %p26_p1 = scmp.eq.s32.totalorder %s25_s26, 0  ;;  %p36_p2 = scmp.eq.s32.totalorder %s700_s21, 0 }
   0x9   : > { %p41_p3 = scmp.ne.s32.totalorder %s692_s19, %s688_s18  ;;  %p42_p4 = scmp.eq.s32.totalorder %s759_s22, 0 }
   0xa   : > { %s775_s27 = scalar_select %p26_p1, %s696_s20, %s28_s25  }
   0xb   : > { %p777_p5 = por %p36_p2, %p35_p0  ;;  %p781_p6 = por %p42_p4, %p41_p3 }
   0xc   : > { %p149_p7 = scmp.eq.s32.totalorder %s759_s22, 1  ;;  %p155_p8 = scmp.eq.s32.totalorder %s517_s23, 1 }
   0xd   : > { %s908_s29 = scalar_select %p781_p6, 1, 0 }
   0xe   : > { %p564_p10 = scmp.lt.s32.totalorder %s700_s21, 2  ;;  %p788_p11 = por %p149_p7, %p35_p0 }
   0xf   : > { %p792_p12 = por %p155_p8, %p41_p3  ;;  %s187_s7 = sand.u32 1, %s696_s20  }
  0x10   : > { %s909_s30 = scalar_select %p788_p11, 1, 0 }
  0x11   : > { %s910_s6 = scalar_select %p792_p12, 1, 0 }
  0x12   : > { %s536_s8 = sshll.u32 %s700_s21, 7  ;;  %s520_s9 = sshll.u32 %s187_s7, 3 }
  0x13   : > { %s801_s12 = scalar_lea.hbm %s899_s0, %s536_s8  ;;  %s191_s13 = scalar_lea.vmem [#allocation2], %s520_s9 }
  0x14   : > { %s199_s14 = sshll.u32 %s191_s13, 4  ;;  %p805_p13 = pnand %p564_p10, %p777_p5  ;;  %s809_s14 = int_to_ptr.vmem [resolvable:$true] %s199_s14 }
  0x15   : > { %s188_s16 = scalar_lea.sflag [#allocation3], %s187_s7  ;;  %s608_s17 = scalar_lea.hbm %s801_s12, 128 }
  0x16   : > { %p609_p2 = scmp.ne.s32.totalorder %s801_s12, %s608_s17  ;;  %p610_p3 = pneg %p805_p13 }
  0x17   : > { %s613_s26 = scalar_lea.hbm %s899_s0, 256  ;;  %p614_p5 = scmp.lt.s32.totalorder %s801_s12, %s899_s0 }
  0x18   : > { %p611_p4 = pnand %p610_p3, %p609_p2  ;;  %p615_p8 = scmp.lt.s32.totalorder %s613_s26, %s608_s17 }
  0x1a   : > { %p612_p7 = pneg %p611_p4  ;;  %p616_p10 = por %p615_p8, %p614_p5 }
  0x1c   : > { %p617_p9 = pnand %p616_p10, %p612_p7 }
  0x1e   : > { %620 = shalt.err (!%p617_p9)
}
  0x1f   : > { %s621_s7 = scalar_lea.vmem %s809_s14, 128  ;;  %s702_s9 = smov [#allocation2]  }
  0x20   : > { %p622_p0 = scmp.ne.s32.totalorder %s809_s14, %s621_s7  ;;  %s626_s10 = sshll.u32 %s702_s9, 4  ;;  %s627_s10 = int_to_ptr.vmem [resolvable:$false] %s626_s10 }
  0x21   : > { %s628_s11 = scalar_lea.vmem %s627_s10, 256  ;;  %p629_p4 = scmp.lt.s32.totalorder %s809_s14, %s627_s10 }
  0x22   : > { %p624_p1 = pnand %p622_p0, %p610_p3  ;;  %p630_p12 = scmp.lt.s32.totalorder %s628_s11, %s621_s7 }
  0x24   : > { %p625_p2 = pneg %p624_p1  ;;  %p631_p11 = por %p630_p12, %p629_p4 }
  0x26   : > { %p632_p6 = pnand %p631_p11, %p625_p2 }
  0x28   : > { %635 = shalt.err (!%p632_p6)
}
  0x29   : > { %559 = dma.hbm_to_vmem [thread:$0]  (!%p805_p13), %s801_s12, 128, %s809_s14, %s188_s16  }
  0x2a   : > { %p912_p9 = scmp.lt.s32.totalorder %s700_s21, 3  ;;  %p913_p7 = scmp.ge.s32.totalorder %s700_s21, 1 }
  0x2c   : > { %p205_p0 = pnand %p913_p7, %p912_p9 }
  0x2d   : > { %s836_s13 = sand.u32 (!%p205_p0), 1, %s692_s19   ;;  %p914_p6 = scmp.ne.s32.totalorder (!%p205_p0), %s908_s29, 0 }
  0x2e   : > { %208 = sbr.rel (%p205_p0) target bundleno = 766 (0x2fe), region = 40  ;;  %s524_s17 = sshll.u32 (!%p205_p0), %s836_s13, 3 }
  0x2f   : > { %s211_s23 = scalar_lea.sflag (!%p205_p0), [#allocation3], %s836_s13  ;;  %s214_s15 = scalar_lea.vmem (!%p205_p0), [#allocation2], %s524_s17 }
  0x33   : > { %679 = dma.done.wait (%p914_p6), %s211_s23, 128  }
  0x34   : > { %681 = vsyncadd (%p914_p6), %s211_s23, 4294967168  ;;  %vm245_vm0 = vcmask 1043456   ;;  %v241_v0 = vld [vmem:[%s214_s15] sm:$0xff]  ;;  %v703_v5 = vmov 0.0   ;;  %vm704_vm1 = vmmov 0   ;;  %vm254_vm2 = vcmask 31744  }
  0x35   : > { %v243_v1 = vcombine.high %v241_v0, %v241_v0  ;;  %v246_v2 = vsel %vm245_vm0, %v241_v0, 0.0  ;;  %542 = vmatprep.subr.mxu0 %v703_v5  ;;  %547 = vmatprep.subr.mxu1 %v703_v5  ;;  %v252_v8 = vld [vmem:[%s900_s1] sm:$0xf]  ;;  %v705_v16 = vmov 0   ;;  %v706_v25 = vmov 839922192  }
  0x36   : > { %544 = vmatprep.mubr.msk.f32.mxu0 %vm704_vm1, %v703_v5  ;;  %549 = vmatprep.mubr.msk.f32.mxu1 %vm704_vm1, %v703_v5  ;;  %v253_v9 = vld [vmem:[%s901_s2] sm:$0xf]  ;;  %v423_v26 = vunpack.c.l.s4 %v706_v25  ;;  %v425_v27 = vlaneseq  ;;  %s537_s7 = sshll.u32 %s759_s22, 7  ;;  %s240_s9 = scalar_lea.vmem [#allocation5], %s524_s17 }
  0x37   : > { %v247_v3 = vsel %vm245_vm0, %v243_v1, 0.0  ;;  %v334_v14 = vld [vmem:[%s902_s3] sm:$0xf]  ;;  %602 = vset.pattern.permute.xlu0 %v705_v16  ;;  %s447_s10 = sshll.u32 %s240_s9, 4  ;;  %s445_s15 = scalar_lea.hbm %s904_s5, %s537_s7  ;;  %s448_s10 = int_to_ptr.vmem [resolvable:$true] %s447_s10 }
  0x38   : > { %v248_v4 = vadd.f32 %v247_v3, %v246_v2  ;;  %v335_v17 = vld [vmem:[%s903_s4] sm:$0xf]  ;;  %v424_v28 = vunpack.c.0.s8 %v423_v26  ;;  %v426_v29 = vshrl.u32 %v425_v27, 7  ;;  %s433_s12 = scalar_lea.sflag [#allocation4], %s836_s13  ;;  %s636_s29 = scalar_lea.vmem %s448_s10, 128 }
  0x39   : > { %p637_p11 = scmp.ne.s32.totalorder %s448_s10, %s636_s29  ;;  %p915_p12 = scmp.ne.s32.totalorder %s909_s30, 0 }
  0x3a   : > { %249 = vadd.xlane.f32.xlu0 %v248_v4  ;;  %v427_v30 = vsub.s32 %v424_v28, %v426_v29  ;;  %s707_s14 = smov [#allocation5]  }
  0x3b   : > { %p638_p13 = pnand %p637_p11, %p915_p12  ;;  %s640_s16 = sshll.u32 %s707_s14, 4  ;;  %s641_s16 = int_to_ptr.vmem [resolvable:$false] %s640_s16 }
  0x3c   : > { %s642_s22 = scalar_lea.vmem %s641_s16, 256  ;;  %p643_p3 = scmp.lt.s32.totalorder %s448_s10, %s641_s16 }
  0x3d   : > { %p639_p1 = pneg %p638_p13  ;;  %p644_p5 = scmp.lt.s32.totalorder %s642_s22, %s636_s29 }
  0x3f   : > { %p645_p8 = por %p644_p5, %p643_p3 }
  0x41   : > { %p646_p10 = pnand %p645_p8, %p639_p1 }
  0xc3   : > { %v250_v6 = vpop.xlane.xlu0 %249 }
  0xc4   : > { %v251_v7 = vmul.f32 0.00390625, %v250_v6 }
  0xc6   : > { %543 = vmatpush3.msk.msra.mxu0 %vm245_vm0, %v251_v7 }
  0xc7   : > { %545 = vmatmul.mubr.msk.f32.vlgmr.msra.gmra.mxu0 %vm254_vm2, %v252_v8 }
 0x187   : > { %v327_v10 = vpop.f32.mrf.mxu0 }
 0x188   : > { %v328_v11 = vadd.f32 %v327_v10, %v253_v9 }
 0x189   : > { %v546_v12 = vpop.f32.mrf.mxu0 }
 0x18a   : > { %v332_v13 = vmul.f32 0.05, %v328_v11  ;;  %vm331_vm3 = vcmp.ge.f32.partialorder %v328_v11, 0.0 }
 0x18c   : > { %v333_v15 = vsel %vm331_vm3, %v328_v11, %v332_v13 }
 0x18d   : > { %548 = vmatpush3.msk.msra.mxu1 %vm245_vm0, %v333_v15 }
 0x18e   : > { %550 = vmatmul.mubr.msk.f32.vlgmr.msra.gmra.mxu1 %vm254_vm2, %v334_v14 }
 0x24e   : > { %v408_v18 = vpop.f32.mrf.mxu1 }
 0x24f   : > { %v409_v19 = vadd.f32 %v408_v18, %v335_v17 }
 0x250   : > { %v551_v20 = vpop.f32.mrf.mxu1 }
 0x251   : > { %v530_v21 = vmul.f32 -1.442695, %v409_v19 }
 0x253   : > { %604 = vpow2.f32 %v530_v21 }
 0x260   : > { %v605_v22 = vpop.eup %604 }
 0x261   : > { %v415_v23 = vadd.f32 1.0, %v605_v22 }
 0x263   : > { %606 = vrcp.f32 %v415_v23 }
 0x270   : > { %v607_v24 = vpop.eup %606 }
 0x271   : > { %420 = vperm.xlu0 %602, %v607_v24  }
 0x2ec   : > { %v421_v31 = vpop.permute.xlu0 %420 }
 0x2ed   : > { %v428_v32 = vrot.slane %v421_v31, %v427_v30 }
 0x2ef   : > { %v430_v33 = vmul.f32 %v428_v32, %v241_v0 }
 0x2f1   : > { %431 = vst [vmem:[%s240_s9] sm:$0xff] %v430_v33 }
 0x2f2   : > { %649 = shalt.err (!%p646_p10)
}
 0x2f3   : > { %s650_s17 = scalar_lea.hbm %s445_s15, 128  ;;  %s654_s26 = scalar_lea.hbm %s904_s5, 256 }
 0x2f4   : > { %p651_p2 = scmp.ne.s32.totalorder %s445_s15, %s650_s17  ;;  %p655_p7 = scmp.lt.s32.totalorder %s445_s15, %s904_s5 }
 0x2f5   : > { %p656_p0 = scmp.lt.s32.totalorder %s654_s26, %s650_s17 }
 0x2f6   : > { %p652_p4 = pnand %p651_p2, %p915_p12 }
 0x2f7   : > { %p657_p6 = por %p656_p0, %p655_p7 }
 0x2f8   : > { %p653_p9 = pneg %p652_p4 }
 0x2fa   : > { %p658_p11 = pnand %p657_p6, %p653_p9 }
 0x2fc   : > { %661 = shalt.err (!%p658_p11)
}
 0x2fd   : > { %554 = dma.vmem_to_hbm [thread:$0]  (%p915_p12), %s448_s10, 128, %s445_s15, %s433_s12  }
 0x2fe PF: > { %s459_s7 = sand.u32 1, %s688_s18   ;;  %p916_p13 = scmp.ne.s32.totalorder %s910_s6, 0 }
 0x2ff   : > { %p917_p1 = scmp.ge.s32.totalorder %s700_s21, 2  ;;  %s460_s9 = scalar_lea.sflag [#allocation4], %s459_s7 }
 0x301   : > { %p561_p3 = pnand %p917_p1, %p916_p13 }
 0x303   : > { %p562_p5 = pneg %p561_p3 }
 0x305   : > { %683 = dma.done.wait (%p562_p5), %s460_s9, 128  }
 0x306   : > { %685 = vsyncadd (%p562_p5), %s460_s9, 4294967168  ;;  %p18_p8 = scmp.ge.s32.totalorder %s763_s24, 4   ;;  %s918_s18 = smov %s692_s19 }
 0x307   : > { %s919_s19 = smov %s696_s20  ;;  %s920_s20 = smov %s775_s27 }
 0x308   : > { %s921_s21 = smov %s763_s24  ;;  %20 = sbr.rel (!%p18_p8) target bundleno = 5 (0x5), region = 85 }
 0x30d   :  { %465 = vsyncpa [#allocation3], 1 }
 0x30e   :  { %467 = vsyncpa [#allocation3 + $0x1], 1 }
 0x30f   :  { %468 = vsyncpa [#allocation4], 1 }
 0x310   :  { %470 = vsyncpa [#allocation4 + $0x1], 1 }

</bundles_post_ra>
